<compile_context>
chip_gen: v7x
topology: tpu7x:2x2x1
jax: 0.10.0
libtpu: 0.0.40
codegen_flags: <defaults>
</compile_context>

<pallas_src>
import functools

import jax
import jax.numpy as jnp
from jax import lax
from jax.experimental import pallas as pl
from jax.experimental.pallas import tpu as pltpu

PAD_token = 0


def _memnn_kernel(story_ref, emb_ref, out_ref, *, max_hops, embedding_dim):
    B, M, T = story_ref.shape
    V = emb_ref.shape[0]
    E = embedding_dim

    story = story_ref[...]                        # (B, M, T) int32
    story_flat = story.reshape(B * M, T)          # (B*M, T)  -- merge leading dims only

    # counts[r, v] = #{t : story_flat[r, t] == v}  (bag-of-words, batched over B*M)
    iota_v = lax.broadcasted_iota(jnp.int32, (B * M, V), 1)
    counts = jnp.zeros((B * M, V), jnp.float32)
    for t in range(T):                            # T is tiny -> static unroll
        tok = story_flat[:, t:t + 1]              # (B*M, 1)
        counts = counts + (tok == iota_v).astype(jnp.float32)

    # Single fused MXU call covering every hop's A and C embedding bags:
    #   (B*M, V) @ (V, (hops+1)*E) -> (B*M, (hops+1)*E)   [128-lane output]
    m_all = jnp.dot(counts, emb_ref[...], preferred_element_type=jnp.float32)
    m_all = m_all.reshape(B, M, (max_hops + 1) * E)       # split leading dim back

    u = jnp.zeros((B, E), jnp.float32)            # u[0] = get_state(bsz) = zeros
    for hop in range(max_hops):                   # hops are sequential -> static unroll
        m_A = m_all[:, :, hop * E:(hop + 1) * E]          # (B, M, E)
        m_C = m_all[:, :, (hop + 1) * E:(hop + 2) * E]    # (B, M, E)

        # attention scores over memory slots, softmax along M (PyTorch dim=1)
        scores = jnp.sum(m_A * u[:, None, :], axis=2)     # (B, M)  lane-reduce over E
        smax = jnp.max(scores, axis=1, keepdims=True)     # (B, 1)
        ex = jnp.exp(scores - smax)                       # (B, M)
        denom = jnp.sum(ex, axis=1, keepdims=True)        # (B, 1)
        prob = ex * pl.reciprocal(denom, approx=True)     # (B, M)

        # o_k[b, e] = sum_m prob[b, m] * m_C[b, m, e]
        o = jnp.sum(m_C * prob[:, :, None], axis=1)       # (B, E)
        u = u + o                                         # u_k = u_{k-1} + o_k

    out_ref[...] = u                               # single full-block store


def encoder_memnn_forward(story, emb_tables, max_hops):
    """story: (M, B, T) integer array (PyTorch input layout).
    emb_tables: (max_hops + 1, V, E) float32.  Returns u_k of shape (B, E)."""
    # glue: the transpose(0, 1) from the PyTorch forward
    story_bmt = jnp.transpose(story, (1, 0, 2)).astype(jnp.int32)   # (B, M, T)
    B, M, T = story_bmt.shape
    H1, V, E = emb_tables.shape

    # host-side layout plumbing: stack hop tables along the feature (lane) axis
    # (V, H1*E) so the kernel does one lane-dense fused matmul.
    emb_flat = jnp.transpose(emb_tables, (1, 0, 2)).reshape(V, H1 * E)

    kernel = functools.partial(_memnn_kernel, max_hops=max_hops, embedding_dim=E)

    return pl.pallas_call(
        kernel,
        out_shape=jax.ShapeDtypeStruct((B, E), jnp.float32),
        grid=(1,),
        in_specs=[
            pl.BlockSpec((B, M, T), lambda i: (0, 0, 0)),
            pl.BlockSpec((V, H1 * E), lambda i: (0, 0)),
        ],
        out_specs=pl.BlockSpec((B, E), lambda i: (0, 0)),
        compiler_params=pltpu.CompilerParams(
            dimension_semantics=("arbitrary",)),
    )(story_bmt, emb_flat)


def encoder_memnn_reference(story, emb_tables, max_hops):
    """Pure-JAX reference mirroring the PyTorch forward (eval mode)."""
    story_bmt = jnp.transpose(story, (1, 0, 2))
    B, M, T = story_bmt.shape
    E = emb_tables.shape[-1]
    u = jnp.zeros((B, E), jnp.float32)
    for hop in range(max_hops):
        embed_A = emb_tables[hop][story_bmt]          # (B, M, T, E)
        m_A = embed_A.sum(axis=2)                     # (B, M, E)
        scores = (m_A * u[:, None, :]).sum(axis=2)    # (B, M)
        prob = jax.nn.softmax(scores, axis=1)         # softmax dim=1
        embed_C = emb_tables[hop + 1][story_bmt]      # (B, M, T, E)
        m_C = embed_C.sum(axis=2)                     # (B, M, E)
        o_k = (m_C * prob[:, :, None]).sum(axis=1)    # (B, E)
        u = u + o_k
    return u


if __name__ == "__main__":
    # module hyper-params (small, consistent with EncoderMemNN.__init__)
    vocab = 64          # num_vocab
    embedding_dim = 32
    max_hops = 3
    dropout = 0.2       # unused at eval
    unk_mask = True     # training-only branch, unused at eval

    # input: story of shape (mem_len=M, batch=B, tokens_per_slot=T)
    M, B, T = 8, 2, 4

    key = jax.random.PRNGKey(0)
    k_emb, k_story = jax.random.split(key)

    # embeddings C_0 .. C_max_hops, ~ N(0, 0.1), padding_idx row zeroed
    emb_tables = 0.1 * jax.random.normal(
        k_emb, (max_hops + 1, vocab, embedding_dim), dtype=jnp.float32)
    emb_tables = emb_tables.at[:, PAD_token, :].set(0.0)

    story = jax.random.randint(k_story, (M, B, T), 0, vocab, dtype=jnp.int32)

    out = encoder_memnn_forward(story, emb_tables, max_hops)
    out = jax.block_until_ready(out)

    ref = encoder_memnn_reference(story, emb_tables, max_hops)
    ref = jax.block_until_ready(ref)

    assert out.shape == (B, embedding_dim)
    # tolerance slightly loosened for the approx softmax reciprocal (EUP vrcp)
    assert jnp.allclose(out, ref, atol=1e-3, rtol=1e-3), (
        f"mismatch: max abs err {jnp.max(jnp.abs(out - ref))}")

    print("KERNEL_OK")
</pallas_src>

<mosaic_0001>
module attributes {stable_mosaic.version = 11 : i64} {
  func.func @_memnn_kernel(%arg0: i32, %arg1: memref<2x8x4xi32, #tpu.memory_space<vmem>>, %arg2: memref<64x128xf32, #tpu.memory_space<vmem>>, %arg3: memref<2x32xf32, #tpu.memory_space<vmem>>) attributes {dimension_semantics = [#tpu.dimension_semantics<arbitrary>], iteration_bounds = array<i64: 1>, scalar_prefetch = 0 : i64, scratch_operands = 0 : i64, tpu.core_type = #tpu.core_type<tc>, window_params = [{pipeline_mode = #tpu.pipeline_mode<synchronous>, transform_indices = @transform_0, window_bounds = array<i64: 2, 8, 4>}, {pipeline_mode = #tpu.pipeline_mode<synchronous>, transform_indices = @transform_1, window_bounds = array<i64: 64, 128>}, {pipeline_mode = #tpu.pipeline_mode<synchronous>, transform_indices = @transform_2, window_bounds = array<i64: 2, 32>}]} {
    %c0 = arith.constant 0 : index
    %c0_0 = arith.constant 0 : index
    %c0_1 = arith.constant 0 : index
    %0 = vector.load %arg1[%c0, %c0_0, %c0_1] : memref<2x8x4xi32, #tpu.memory_space<vmem>>, vector<2x8x4xi32>
    %1 = vector.shape_cast %0 : vector<2x8x4xi32> to vector<16x4xi32>
    %2 = tpu.iota {dimensions = array<i32: 1>} : vector<16x64xi32>
    %cst = arith.constant 0.000000e+00 : f32
    %3 = vector.broadcast %cst : f32 to vector<16x64xf32>
    %4 = vector.extract_strided_slice %1 {offsets = [0, 0], sizes = [16, 1], strides = [1, 1]} : vector<16x4xi32> to vector<16x1xi32>
    %5 = vector.broadcast %4 : vector<16x1xi32> to vector<16x64xi32>
    %6 = arith.cmpi eq, %5, %2 : vector<16x64xi32>
    %7 = arith.extui %6 : vector<16x64xi1> to vector<16x64xi32>
    %8 = arith.sitofp %7 : vector<16x64xi32> to vector<16x64xf32>
    %9 = arith.addf %3, %8 : vector<16x64xf32>
    %10 = vector.extract_strided_slice %1 {offsets = [0, 1], sizes = [16, 1], strides = [1, 1]} : vector<16x4xi32> to vector<16x1xi32>
    %11 = vector.broadcast %10 : vector<16x1xi32> to vector<16x64xi32>
    %12 = arith.cmpi eq, %11, %2 : vector<16x64xi32>
    %13 = arith.extui %12 : vector<16x64xi1> to vector<16x64xi32>
    %14 = arith.sitofp %13 : vector<16x64xi32> to vector<16x64xf32>
    %15 = arith.addf %9, %14 : vector<16x64xf32>
    %16 = vector.extract_strided_slice %1 {offsets = [0, 2], sizes = [16, 1], strides = [1, 1]} : vector<16x4xi32> to vector<16x1xi32>
    %17 = vector.broadcast %16 : vector<16x1xi32> to vector<16x64xi32>
    %18 = arith.cmpi eq, %17, %2 : vector<16x64xi32>
    %19 = arith.extui %18 : vector<16x64xi1> to vector<16x64xi32>
    %20 = arith.sitofp %19 : vector<16x64xi32> to vector<16x64xf32>
    %21 = arith.addf %15, %20 : vector<16x64xf32>
    %22 = vector.extract_strided_slice %1 {offsets = [0, 3], sizes = [16, 1], strides = [1, 1]} : vector<16x4xi32> to vector<16x1xi32>
    %23 = vector.broadcast %22 : vector<16x1xi32> to vector<16x64xi32>
    %24 = arith.cmpi eq, %23, %2 : vector<16x64xi32>
    %25 = arith.extui %24 : vector<16x64xi1> to vector<16x64xi32>
    %26 = arith.sitofp %25 : vector<16x64xi32> to vector<16x64xf32>
    %27 = arith.addf %21, %26 : vector<16x64xf32>
    %c0_2 = arith.constant 0 : index
    %c0_3 = arith.constant 0 : index
    %28 = vector.load %arg2[%c0_2, %c0_3] : memref<64x128xf32, #tpu.memory_space<vmem>>, vector<64x128xf32>
    %cst_4 = arith.constant dense<0.000000e+00> : vector<16x128xf32>
    %29 = tpu.matmul %27, %28, %cst_4 {dimension_numbers = #tpu.dot_dimension_numbers<[1], [0], [0], [1], [0, 0, 1, 1], [], []>} : vector<16x64xf32>, vector<64x128xf32>, vector<16x128xf32> -> vector<16x128xf32>
    %30 = vector.shape_cast %29 : vector<16x128xf32> to vector<2x8x128xf32>
    %cst_5 = arith.constant 0.000000e+00 : f32
    %31 = vector.broadcast %cst_5 : f32 to vector<2x32xf32>
    %32 = vector.extract_strided_slice %30 {offsets = [0, 0, 0], sizes = [2, 8, 32], strides = [1, 1, 1]} : vector<2x8x128xf32> to vector<2x8x32xf32>
    %33 = vector.extract_strided_slice %30 {offsets = [0, 0, 32], sizes = [2, 8, 32], strides = [1, 1, 1]} : vector<2x8x128xf32> to vector<2x8x32xf32>
    %34 = vector.shape_cast %31 : vector<2x32xf32> to vector<2x1x32xf32>
    %35 = vector.broadcast %34 : vector<2x1x32xf32> to vector<2x8x32xf32>
    %36 = arith.mulf %32, %35 : vector<2x8x32xf32>
    %cst_6 = arith.constant dense<0.000000e+00> : vector<2x8xf32>
    %37 = vector.multi_reduction <add>, %36, %cst_6 [2] : vector<2x8x32xf32> to vector<2x8xf32>
    %cst_7 = arith.constant dense<0xFF800000> : vector<2xf32>
    %38 = vector.multi_reduction <maximumf>, %37, %cst_7 [1] : vector<2x8xf32> to vector<2xf32>
    %39 = vector.shape_cast %38 : vector<2xf32> to vector<2x1xf32>
    %40 = vector.broadcast %39 : vector<2x1xf32> to vector<2x8xf32>
    %41 = arith.subf %37, %40 : vector<2x8xf32>
    %42 = math.exp %41 : vector<2x8xf32>
    %cst_8 = arith.constant dense<0.000000e+00> : vector<2xf32>
    %43 = vector.multi_reduction <add>, %42, %cst_8 [1] : vector<2x8xf32> to vector<2xf32>
    %44 = vector.shape_cast %43 : vector<2xf32> to vector<2x1xf32>
    %45 = tpu.reciprocal %44 {approx = true} : vector<2x1xf32> -> vector<2x1xf32>
    %46 = vector.broadcast %45 : vector<2x1xf32> to vector<2x8xf32>
    %47 = arith.mulf %42, %46 : vector<2x8xf32>
    %48 = vector.shape_cast %47 : vector<2x8xf32> to vector<2x8x1xf32>
    %49 = vector.broadcast %48 : vector<2x8x1xf32> to vector<2x8x32xf32>
    %50 = arith.mulf %33, %49 : vector<2x8x32xf32>
    %cst_9 = arith.constant dense<0.000000e+00> : vector<2x32xf32>
    %51 = vector.multi_reduction <add>, %50, %cst_9 [1] : vector<2x8x32xf32> to vector<2x32xf32>
    %52 = arith.addf %31, %51 : vector<2x32xf32>
    %53 = vector.extract_strided_slice %30 {offsets = [0, 0, 32], sizes = [2, 8, 32], strides = [1, 1, 1]} : vector<2x8x128xf32> to vector<2x8x32xf32>
    %54 = vector.extract_strided_slice %30 {offsets = [0, 0, 64], sizes = [2, 8, 32], strides = [1, 1, 1]} : vector<2x8x128xf32> to vector<2x8x32xf32>
    %55 = vector.shape_cast %52 : vector<2x32xf32> to vector<2x1x32xf32>
    %56 = vector.broadcast %55 : vector<2x1x32xf32> to vector<2x8x32xf32>
    %57 = arith.mulf %53, %56 : vector<2x8x32xf32>
    %cst_10 = arith.constant dense<0.000000e+00> : vector<2x8xf32>
    %58 = vector.multi_reduction <add>, %57, %cst_10 [2] : vector<2x8x32xf32> to vector<2x8xf32>
    %cst_11 = arith.constant dense<0xFF800000> : vector<2xf32>
    %59 = vector.multi_reduction <maximumf>, %58, %cst_11 [1] : vector<2x8xf32> to vector<2xf32>
    %60 = vector.shape_cast %59 : vector<2xf32> to vector<2x1xf32>
    %61 = vector.broadcast %60 : vector<2x1xf32> to vector<2x8xf32>
    %62 = arith.subf %58, %61 : vector<2x8xf32>
    %63 = math.exp %62 : vector<2x8xf32>
    %cst_12 = arith.constant dense<0.000000e+00> : vector<2xf32>
    %64 = vector.multi_reduction <add>, %63, %cst_12 [1] : vector<2x8xf32> to vector<2xf32>
    %65 = vector.shape_cast %64 : vector<2xf32> to vector<2x1xf32>
    %66 = tpu.reciprocal %65 {approx = true} : vector<2x1xf32> -> vector<2x1xf32>
    %67 = vector.broadcast %66 : vector<2x1xf32> to vector<2x8xf32>
    %68 = arith.mulf %63, %67 : vector<2x8xf32>
    %69 = vector.shape_cast %68 : vector<2x8xf32> to vector<2x8x1xf32>
    %70 = vector.broadcast %69 : vector<2x8x1xf32> to vector<2x8x32xf32>
    %71 = arith.mulf %54, %70 : vector<2x8x32xf32>
    %cst_13 = arith.constant dense<0.000000e+00> : vector<2x32xf32>
    %72 = vector.multi_reduction <add>, %71, %cst_13 [1] : vector<2x8x32xf32> to vector<2x32xf32>
    %73 = arith.addf %52, %72 : vector<2x32xf32>
    %74 = vector.extract_strided_slice %30 {offsets = [0, 0, 64], sizes = [2, 8, 32], strides = [1, 1, 1]} : vector<2x8x128xf32> to vector<2x8x32xf32>
    %75 = vector.extract_strided_slice %30 {offsets = [0, 0, 96], sizes = [2, 8, 32], strides = [1, 1, 1]} : vector<2x8x128xf32> to vector<2x8x32xf32>
    %76 = vector.shape_cast %73 : vector<2x32xf32> to vector<2x1x32xf32>
    %77 = vector.broadcast %76 : vector<2x1x32xf32> to vector<2x8x32xf32>
    %78 = arith.mulf %74, %77 : vector<2x8x32xf32>
    %cst_14 = arith.constant dense<0.000000e+00> : vector<2x8xf32>
    %79 = vector.multi_reduction <add>, %78, %cst_14 [2] : vector<2x8x32xf32> to vector<2x8xf32>
    %cst_15 = arith.constant dense<0xFF800000> : vector<2xf32>
    %80 = vector.multi_reduction <maximumf>, %79, %cst_15 [1] : vector<2x8xf32> to vector<2xf32>
    %81 = vector.shape_cast %80 : vector<2xf32> to vector<2x1xf32>
    %82 = vector.broadcast %81 : vector<2x1xf32> to vector<2x8xf32>
    %83 = arith.subf %79, %82 : vector<2x8xf32>
    %84 = math.exp %83 : vector<2x8xf32>
    %cst_16 = arith.constant dense<0.000000e+00> : vector<2xf32>
    %85 = vector.multi_reduction <add>, %84, %cst_16 [1] : vector<2x8xf32> to vector<2xf32>
    %86 = vector.shape_cast %85 : vector<2xf32> to vector<2x1xf32>
    %87 = tpu.reciprocal %86 {approx = true} : vector<2x1xf32> -> vector<2x1xf32>
    %88 = vector.broadcast %87 : vector<2x1xf32> to vector<2x8xf32>
    %89 = arith.mulf %84, %88 : vector<2x8xf32>
    %90 = vector.shape_cast %89 : vector<2x8xf32> to vector<2x8x1xf32>
    %91 = vector.broadcast %90 : vector<2x8x1xf32> to vector<2x8x32xf32>
    %92 = arith.mulf %75, %91 : vector<2x8x32xf32>
    %cst_17 = arith.constant dense<0.000000e+00> : vector<2x32xf32>
    %93 = vector.multi_reduction <add>, %92, %cst_17 [1] : vector<2x8x32xf32> to vector<2x32xf32>
    %94 = arith.addf %73, %93 : vector<2x32xf32>
    %c0_18 = arith.constant 0 : index
    %c0_19 = arith.constant 0 : index
    %95 = vector.load %arg3[%c0_18, %c0_19] : memref<2x32xf32, #tpu.memory_space<vmem>>, vector<2x32xf32>
    tpu.vector_store %arg3[%c0_18, %c0_19], %94 {strides = array<i32>} : memref<2x32xf32, #tpu.memory_space<vmem>>, vector<2x32xf32>,
    return
  }
  func.func @transform_0(%arg0: i32) -> (i32, i32, i32) {
    %c0_i32 = arith.constant 0 : i32
    %c0_i32_0 = arith.constant 0 : i32
    %c0_i32_1 = arith.constant 0 : i32
    %c0_i32_2 = arith.constant 0 : i32
    return %c0_i32, %c0_i32_0, %c0_i32_1 : i32, i32, i32
  }
  func.func @transform_1(%arg0: i32) -> (i32, i32) {
    %c0_i32 = arith.constant 0 : i32
    %c0_i32_0 = arith.constant 0 : i32
    %c0_i32_1 = arith.constant 0 : i32
    return %c0_i32, %c0_i32_0 : i32, i32
  }
  func.func @transform_2(%arg0: i32) -> (i32, i32) {
    %c0_i32 = arith.constant 0 : i32
    %c0_i32_0 = arith.constant 0 : i32
    %c0_i32_1 = arith.constant 0 : i32
    return %c0_i32, %c0_i32_0 : i32, i32
  }
}

</mosaic_0001>

<bundles_post_ra>
// kernel: tpu_custom_call.1
= control target key start
LH: loop header
LB: loop body
LE: loop exit
PB: predicated region body
PF: predicated region fallthrough
CT: control target
= control target key end

     0   :  { %7 = vsyncpa [#allocation3], 0  ;;  %s854_s0 = inlined_call_operand.vmem [shape: s32[2,8,4], index: 0, kind: input, shape index: {}]   ;;  %s855_s1 = inlined_call_operand.hbm [shape: f32[64,128], index: 1, kind: input, shape index: {}]   ;;  %s856_s2 = inlined_call_operand.hbm [shape: f32[2,32], index: 2, kind: output, shape index: {}]  }
   0x1   :  { %8 = vsyncpa [#allocation4], 0  ;;  %s705_s9 = smov [#allocation2]   ;;  %s657_s13 = scalar_lea.hbm %s855_s1, 1024 }
   0x2   :  { %s16_s10 = sshll.u32 %s705_s9, 4  ;;  %p658_p0 = scmp.ne.s32.totalorder %s855_s1, %s657_s13  ;;  %s17_s10 = int_to_ptr.vmem [resolvable:$true] %s16_s10 }
   0x3   :  { %p661_p1 = scmp.lt.u32.totalorder %s657_s13, %s855_s1 }
   0x5   :  { %p663_p2 = pnand %p661_p1, %p658_p0 }
   0x7   :  { %666 = shalt.err (!%p663_p2)
}
   0x8   :  { %s667_s18 = scalar_lea.vmem %s17_s10, 1024  ;;  %p672_p4 = scmp.lt.s32.totalorder %s17_s10, %s17_s10 }
   0x9   :  { %p668_p3 = scmp.ne.s32.totalorder %s17_s10, %s667_s18  ;;  %p673_p5 = scmp.lt.s32.totalorder %s667_s18, %s667_s18 }
   0xb   :  { %p674_p6 = por %p673_p5, %p672_p4 }
   0xd   :  { %p675_p7 = pnand %p674_p6, %p668_p3 }
   0xf   :  { %678 = shalt.err (!%p675_p7)
}
  0x10   :  { %s706_s19 = smov 128   ;;  %s707_s20 = smov 8  }
  0x11   :  { %22 = dma.hbm_to_vmem [thread:$0]  %s855_s1, 1024, %s17_s10, [#allocation3], %s706_s19, %s706_s19, %s707_s20  }
  0x12   :  { %701 = dma.done.wait [#allocation3], 1024  }
  0x13   :  { %702 = vsyncadd [#allocation3], 4294966272  ;;  %v708_v0 = vmov 0   ;;  %v27_v1 = vld [vmem:[%s854_s0 + $0x8] sm:$0xff]  ;;  %v26_v2 = vld [vmem:[%s854_s0] sm:$0xff]  ;;  %v709_v3 = vmov 1   ;;  %v28_v18 = vlaneseq }
  0x14   :  { %632 = vset.pattern.permute.xlu1 %v708_v0  ;;  %630 = vset.pattern.permute.xlu0 %v708_v0  ;;  %v86_v4 = vld [vmem:[#allocation2] sm:$0xff]  ;;  %v87_v5 = vld [vmem:[#allocation2 + $0x8] sm:$0xff]  ;;  %v88_v7 = vld [vmem:[#allocation2 + $0x10] sm:$0xff]  ;;  %v710_v9 = vmov 2   ;;  %v711_v14 = vmov 3   ;;  %v712_v24 = vmov 0.0  }
  0x15   :  { %34 = vperm.xlu1 %632, %v27_v1   ;;  %31 = vperm.xlu0 %630, %v26_v2   ;;  %v602_v6 = vpack.c.bf16 %v87_v5, %v86_v4  ;;  %v89_v8 = vld [vmem:[#allocation2 + $0x18] sm:$0xff]  ;;  %v90_v11 = vld [vmem:[#allocation2 + $0x20] sm:$0xff]  ;;  %v91_v12 = vld [vmem:[#allocation2 + $0x28] sm:$0xff]  ;;  %v29_v21 = vand.u32 127, %v28_v18  ;;  %vm94_vm7 = vcmask 523264   ;;  %vm178_vm9 = vcmask 261120  }
  0x16   :  { %v606_v10 = vpack.c.bf16 %v89_v8, %v88_v7  ;;  %v610_v13 = vpack.c.bf16 %v91_v12, %v90_v11  ;;  %v92_v15 = vld [vmem:[#allocation2 + $0x30] sm:$0xff]  ;;  %v93_v16 = vld [vmem:[#allocation2 + $0x38] sm:$0xff]  ;;  %v188_v49 = vshrl.u32 %v28_v18, 7  ;;  %vm195_vm10 = vcmask 1041409   ;;  %s713_s0 = smov 96   ;;  %s714_s1 = smov 32  }
  0x17   :  { %603 = vmatprep.subr.bf16.mxu0 %v602_v6  ;;  %v614_v17 = vpack.c.bf16 %v93_v16, %v92_v15  ;;  %vm198_vm11 = vcmask 58368   ;;  %vm266_vm12 = vcmask 523520   ;;  %vm378_vm13 = vcmask 785920   ;;  %s715_s27 = smov 64   ;;  %s716_s28 = smov [#allocation5]  }
  0x18   :  { %605 = vmatpush3.bf16.msra.mxu0 %v602_v6  ;;  %v758_v50 = vsub.s32 %v29_v21, %v188_v49  ;;  %v764_v57 = vsub.s32 0, %v188_v49  ;;  %v766_v58 = vsub.s32 1, %v188_v49  ;;  %vm514_vm14 = vcmask 1048320   ;;  %s554_s29 = sshll.u32 %s716_s28, 4  ;;  %s555_s29 = int_to_ptr.vmem [resolvable:$true] %s554_s29 }
  0x19   :  { %633 = vset.pattern.permute.xlu1 %v709_v3  ;;  %631 = vset.pattern.permute.xlu0 %v709_v3  ;;  %vm546_vm15 = vcmask 254976   ;;  %s679_s30 = scalar_lea.vmem %s555_s29, 32  ;;  %p684_p9 = scmp.lt.s32.totalorder %s555_s29, %s555_s29 }
  0x1a   :  { %48 = vperm.xlu1 %633, %v27_v1   ;;  %45 = vperm.xlu0 %631, %v26_v2   ;;  %p680_p8 = scmp.ne.s32.totalorder %s555_s29, %s679_s30  ;;  %p685_p10 = scmp.lt.s32.totalorder %s679_s30, %s679_s30 }
  0x1b   :  { %607 = vmatprep.subr.bf16.mxu0 %v606_v10 }
  0x1c   :  { %609 = vmatpush3.bf16.msra.mxu0 %v606_v10  ;;  %p686_p11 = por %p685_p10, %p684_p9 }
  0x1d   :  { %611 = vmatprep.subr.bf16.mxu0 %v610_v13 }
  0x1e   :  { %634 = vset.pattern.permute.xlu1 %v710_v9  ;;  %635 = vset.pattern.permute.xlu0 %v710_v9  ;;  %p687_p12 = pnand %p686_p11, %p680_p8 }
  0x1f   :  { %59 = vperm.xlu1 %634, %v26_v2   ;;  %62 = vperm.xlu0 %635, %v27_v1  }
  0x20   :  { %613 = vmatpush3.bf16.msra.mxu0 %v610_v13 }
  0x21   :  { %615 = vmatprep.subr.bf16.mxu0 %v614_v17 }
  0x23   :  { %636 = vset.pattern.permute.xlu1 %v711_v14  ;;  %637 = vset.pattern.permute.xlu0 %v708_v0 }
  0x24   :  { %73 = vperm.xlu1 %636, %v26_v2   ;;  %617 = vmatpush3.bf16.msra.mxu0 %v614_v17 }
  0x28   :  { %76 = vperm.xlu1 %636, %v27_v1  }
  0x2c   :  { %638 = vset.pattern.permute.xlu1 %v708_v0 }
  0x94   :  { %v35_v19 = vpop.permute.xlu1 %34  ;;  %v32_v20 = vpop.permute.xlu0 %31 }
  0x95   :  { %vm36_vm0 = vcmp.eq.s32.totalorder %v32_v20, %v29_v21  ;;  %vm37_vm4 = vcmp.eq.s32.totalorder %v35_v19, %v29_v21 }
  0x96   :  { %v563_v25 = vsel %vm36_vm0, 1.0, %v712_v24  ;;  %v564_v34 = vsel %vm37_vm4, 1.0, %v712_v24 }
  0x99   :  { %v49_v22 = vpop.permute.xlu1 %48  ;;  %v46_v23 = vpop.permute.xlu0 %45 }
  0x9a   :  { %vm50_vm1 = vcmp.eq.s32.totalorder %v46_v23, %v29_v21  ;;  %vm51_vm3 = vcmp.eq.s32.totalorder %v49_v22, %v29_v21 }
  0x9b   :  { %v565_v26 = vsel %vm50_vm1, 1.0, %v712_v24  ;;  %v566_v31 = vsel %vm51_vm3, 1.0, %v712_v24 }
  0x9c   :  { %v56_v29 = vadd.f32 %v565_v26, %v563_v25  ;;  %v57_v37 = vadd.f32 %v566_v31, %v564_v34 }
  0x9e   :  { %v60_v27 = vpop.permute.xlu1 %59  ;;  %v63_v28 = vpop.permute.xlu0 %62 }
  0x9f   :  { %vm64_vm2 = vcmp.eq.s32.totalorder %v60_v27, %v29_v21  ;;  %vm65_vm5 = vcmp.eq.s32.totalorder %v63_v28, %v29_v21 }
  0xa0   :  { %v567_v30 = vsel %vm64_vm2, 1.0, %v712_v24  ;;  %v568_v35 = vsel %vm65_vm5, 1.0, %v712_v24 }
  0xa1   :  { %v70_v33 = vadd.f32 %v567_v30, %v56_v29  ;;  %v71_v40 = vadd.f32 %v568_v35, %v57_v37 }
  0xa3   :  { %v74_v32 = vpop.permute.xlu1 %73 }
  0xa4   :  { %vm78_vm6 = vcmp.eq.s32.totalorder %v74_v32, %v29_v21 }
  0xa5   :  { %v569_v36 = vsel %vm78_vm6, 1.0, %v712_v24 }
  0xa6   :  { %v84_v38 = vadd.f32 %v569_v36, %v70_v33 }
  0xa7   :  { %v77_v39 = vpop.permute.xlu1 %76 }
  0xa8   :  { %vm79_vm8 = vcmp.eq.s32.totalorder %v77_v39, %v29_v21  ;;  %599 = vmatprep.mubr.msk.f32.mxu0 %vm94_vm7, %v84_v38 }
  0xa9   :  { %v570_v41 = vsel %vm79_vm8, 1.0, %v712_v24 }
  0xaa   :  { %v85_v42 = vadd.f32 %v570_v41, %v71_v40 }
  0xac   :  { %600 = vmatmul.mubr.msk.f32.vlgmr.msra.gmra.mrb[0].mxu0 %vm94_vm7, %v85_v42 }
 0x17f   :  { %v750_v43 = vpop.f32.mrb[0].mxu0 }
 0x180   :  { %v752_v44 = vpop.f32.mrb[1].mxu0  ;;  %v177_v45 = vmul.f32 0.0, %v750_v43 }
 0x181   :  { %v176_v46 = vmul.f32 0.0, %v752_v44 }
 0x182   :  { %v182_v47 = vsel %vm178_vm9, %v177_v45, 0.0 }
 0x183   :  { %183 = vadd.xlane.f32.xlu1 %v182_v47  ;;  %v179_v48 = vsel %vm178_vm9, %v176_v46, 0.0 }
 0x184   :  { %180 = vadd.xlane.f32.xlu0 %v179_v48 }
 0x210   :  { %v184_v51 = vpop.xlane.xlu1 %183 }
 0x211   :  { %v194_v52 = vrot.slane %v184_v51, %v758_v50  ;;  %v181_v53 = vpop.xlane.xlu0 %180 }
 0x212   :  { %v190_v54 = vrot.slane %v181_v53, %v758_v50 }
 0x214   :  { %v196_v55 = vsel %vm195_vm10, %v194_v52, %v190_v54 }
 0x215   :  { %v199_v56 = vsel %vm198_vm11, %v196_v55, -inf }
 0x216   :  { %200 = vmax.xlane.f32.xlu0 %v199_v56 }
 0x2a3   :  { %v201_v59 = vpop.xlane.xlu0 %200 }
 0x2a4   :  { %v206_v60 = vrot.slane %v201_v59, %v764_v57  ;;  %v210_v61 = vrot.slane %v201_v59, %v766_v58 }
 0x2a6   :  { %v213_v62 = vsub.f32 %v181_v53, %v206_v60  ;;  %v214_v63 = vsub.f32 %v184_v51, %v210_v61 }
 0x2a8   :  { %v215_v0 = vmul.f32 1.442695, %v213_v62  ;;  %v217_v1 = vmul.f32 1.442695, %v214_v63 }
 0x2aa   :  { %639 = vpow2.f32 %v215_v0 }
 0x2ab   :  { %641 = vpow2.f32 %v217_v1 }
 0x2b4   :  { %v640_v2 = vpop.eup %639 }
 0x2b5   :  { %v642_v3 = vpop.eup %641  ;;  %222 = vperm.xlu0 %637, %v640_v2  }
 0x2b6   :  { %225 = vperm.xlu1 %638, %v642_v3  }
 0x334   :  { %v223_v4 = vpop.permute.xlu0 %222 }
 0x335   :  { %v226_v5 = vpop.permute.xlu1 %225  ;;  %v230_v6 = vrot.slane %v223_v4, %v758_v50 }
 0x336   :  { %v234_v7 = vrot.slane %v226_v5, %v758_v50 }
 0x338   :  { %v235_v8 = vsel %vm195_vm10, %v234_v7, %v230_v6 }
 0x339   :  { %v237_v9 = vsel %vm198_vm11, %v235_v8, 0.0 }
 0x33a   :  { %238 = vadd.xlane.f32.xlu1 %v237_v9 }
 0x3c7   :  { %v239_v10 = vpop.xlane.xlu1 %238 }
 0x3c8   :  { %643 = vrcp.f32 %v239_v10 }
 0x3d2   :  { %v644_v11 = vpop.eup %643 }
 0x3d3   :  { %v245_v12 = vrot.slane %v644_v11, %v764_v57  ;;  %v249_v14 = vrot.slane %v644_v11, %v766_v58 }
 0x3d5   :  { %v252_v13 = vmul.f32 %v640_v2, %v245_v12  ;;  %v253_v15 = vmul.f32 %v642_v3, %v249_v14 }
 0x3d7   :  { %256 = vperm.xlu0 %637, %v252_v13  }
 0x3db   :  { %261 = vperm.xlu0 %637, %v253_v15  }
 0x456   :  { %v257_v16 = vpop.permute.xlu0 %256 }
 0x457   :  { %v264_v17 = vmul.f32 %v257_v16, %v752_v44 }
 0x459   :  { %v267_v18 = vsel %vm266_vm12, %v264_v17, 0.0 }
 0x45a   :  { %v268_v19 = vrot.slane %v267_v18, 4  ;;  %v262_v20 = vpop.permute.xlu0 %261 }
 0x45b   :  { %v265_v21 = vmul.f32 %v750_v43, %v262_v20 }
 0x45c   :  { %v269_v22 = vadd.f32 %v268_v19, %v267_v18 }
 0x45d   :  { %v274_v23 = vsel %vm266_vm12, %v265_v21, 0.0 }
 0x45e   :  { %v270_v24 = vrot.slane %v269_v22, 2  ;;  %v275_v25 = vrot.slane %v274_v23, 4 }
 0x460   :  { %v271_v26 = vadd.f32 %v270_v24, %v269_v22  ;;  %v276_v27 = vadd.f32 %v275_v25, %v274_v23 }
 0x462   :  { %v272_v28 = vrot.slane %v271_v26, 1  ;;  %v277_v29 = vrot.slane %v276_v27, 2 }
 0x464   :  { %v278_v30 = vadd.f32 %v277_v29, %v276_v27  ;;  %v778_v31 = vadd.f32 %v272_v28, %v271_v26 }
 0x466   :  { %v279_v32 = vrot.slane %v278_v30, 1  ;;  %v283_v33 = vmul.f32 %v778_v31, %v752_v44 }
 0x468   :  { %287 = vrot.lane.b32.xlu0 %v283_v33, %s713_s0  ;;  %v783_v34 = vadd.f32 %v279_v32, %v278_v30 }
 0x46a   :  { %v284_v35 = vmul.f32 %v750_v43, %v783_v34 }
 0x46c   :  { %289 = vrot.lane.b32.xlu1 %v284_v35, %s713_s0 }
 0x4da   :  { %v288_v36 = vpop.permute.xlu0 %287 }
 0x4db   :  { %v293_v37 = vsel %vm178_vm9, %v288_v36, 0.0 }
 0x4dc   :  { %294 = vadd.xlane.f32.xlu0 %v293_v37 }
 0x4de   :  { %v290_v38 = vpop.permute.xlu1 %289 }
 0x4df   :  { %v296_v39 = vsel %vm178_vm9, %v290_v38, 0.0 }
 0x4e0   :  { %297 = vadd.xlane.f32.xlu1 %v296_v39 }
 0x569   :  { %v295_v40 = vpop.xlane.xlu0 %294 }
 0x56a   :  { %v304_v42 = vrot.slane %v295_v40, %v758_v50 }
 0x56d   :  { %v298_v41 = vpop.xlane.xlu1 %297 }
 0x56e   :  { %v308_v45 = vrot.slane %v298_v41, %v758_v50 }
 0x570   :  { %v309_v46 = vsel %vm195_vm10, %v308_v45, %v304_v42 }
 0x571   :  { %v311_v47 = vsel %vm198_vm11, %v309_v46, -inf }
 0x572   :  { %312 = vmax.xlane.f32.xlu0 %v311_v47 }
 0x5ff   :  { %v313_v48 = vpop.xlane.xlu0 %312 }
 0x600   :  { %v318_v49 = vrot.slane %v313_v48, %v764_v57  ;;  %v322_v51 = vrot.slane %v313_v48, %v766_v58 }
 0x602   :  { %v325_v52 = vsub.f32 %v295_v40, %v318_v49  ;;  %v326_v53 = vsub.f32 %v298_v41, %v322_v51 }
 0x604   :  { %v327_v54 = vmul.f32 1.442695, %v325_v52  ;;  %v329_v55 = vmul.f32 1.442695, %v326_v53 }
 0x606   :  { %645 = vpow2.f32 %v327_v54 }
 0x607   :  { %647 = vpow2.f32 %v329_v55 }
 0x610   :  { %v646_v56 = vpop.eup %645 }
 0x611   :  { %v648_v59 = vpop.eup %647  ;;  %334 = vperm.xlu0 %637, %v646_v56  }
 0x612   :  { %337 = vperm.xlu1 %638, %v648_v59  }
 0x690   :  { %v335_v60 = vpop.permute.xlu0 %334 }
 0x691   :  { %v338_v61 = vpop.permute.xlu1 %337  ;;  %v342_v62 = vrot.slane %v335_v60, %v758_v50 }
 0x692   :  { %v346_v63 = vrot.slane %v338_v61, %v758_v50 }
 0x694   :  { %v347_v0 = vsel %vm195_vm10, %v346_v63, %v342_v62 }
 0x695   :  { %v349_v1 = vsel %vm198_vm11, %v347_v0, 0.0 }
 0x696   :  { %350 = vadd.xlane.f32.xlu0 %v349_v1 }
 0x723   :  { %v351_v2 = vpop.xlane.xlu0 %350 }
 0x724   :  { %649 = vrcp.f32 %v351_v2 }
 0x72e   :  { %v650_v3 = vpop.eup %649 }
 0x72f   :  { %v357_v4 = vrot.slane %v650_v3, %v764_v57  ;;  %v361_v6 = vrot.slane %v650_v3, %v766_v58 }
 0x731   :  { %v364_v5 = vmul.f32 %v646_v56, %v357_v4  ;;  %v365_v7 = vmul.f32 %v648_v59, %v361_v6 }
 0x733   :  { %368 = vperm.xlu1 %638, %v364_v5  }
 0x737   :  { %373 = vperm.xlu1 %638, %v365_v7  }
 0x7b2   :  { %v369_v8 = vpop.permute.xlu1 %368 }
 0x7b3   :  { %v376_v9 = vmul.f32 %v369_v8, %v752_v44 }
 0x7b5   :  { %v379_v10 = vsel %vm378_vm13, %v376_v9, 0.0 }
 0x7b6   :  { %v380_v11 = vrot.slane %v379_v10, 4  ;;  %v374_v12 = vpop.permute.xlu1 %373 }
 0x7b7   :  { %v377_v13 = vmul.f32 %v750_v43, %v374_v12 }
 0x7b8   :  { %v381_v14 = vadd.f32 %v380_v11, %v379_v10 }
 0x7b9   :  { %v386_v15 = vsel %vm378_vm13, %v377_v13, 0.0 }
 0x7ba   :  { %v382_v16 = vrot.slane %v381_v14, 2  ;;  %v387_v17 = vrot.slane %v386_v15, 4 }
 0x7bc   :  { %v383_v18 = vadd.f32 %v382_v16, %v381_v14  ;;  %v388_v19 = vadd.f32 %v387_v17, %v386_v15 }
 0x7be   :  { %v389_v20 = vrot.slane %v388_v19, 2  ;;  %v384_v21 = vrot.slane %v383_v18, 1 }
 0x7c0   :  { %v390_v22 = vadd.f32 %v389_v20, %v388_v19  ;;  %v385_v23 = vadd.f32 %v384_v21, %v383_v18 }
 0x7c2   :  { %395 = vrot.lane.b32.xlu1 %v385_v23, %s713_s0  ;;  %v391_v24 = vrot.slane %v390_v22, 1 }
 0x7c4   :  { %v392_v25 = vadd.f32 %v391_v24, %v390_v22 }
 0x7c6   :  { %397 = vrot.lane.b32.xlu1 %v392_v25, %s713_s0 }
 0x834   :  { %v396_v26 = vpop.permute.xlu1 %395 }
 0x835   :  { %v807_v27 = vadd.f32 %v396_v26, %v778_v31 }
 0x837   :  { %v406_v28 = vrot.slane %v807_v27, %v764_v57 }
 0x838   :  { %v398_v29 = vpop.permute.xlu1 %397 }
 0x839   :  { %v812_v30 = vadd.f32 %v398_v29, %v783_v34  ;;  %413 = vrot.lane.b32.xlu1 %v406_v28, %s714_s1 }
 0x83b   :  { %v410_v32 = vrot.slane %v812_v30, %v764_v57 }
 0x83d   :  { %415 = vrot.lane.b32.xlu0 %v410_v32, %s714_s1 }
 0x8ab   :  { %v414_v33 = vpop.permute.xlu1 %413 }
 0x8ac   :  { %v419_v35 = vmul.f32 %v414_v33, %v752_v44 }
 0x8ae   :  { %423 = vrot.lane.b32.xlu1 %v419_v35, %s715_s27 }
 0x8af   :  { %v416_v31 = vpop.permute.xlu0 %415 }
 0x8b0   :  { %v420_v36 = vmul.f32 %v750_v43, %v416_v31 }
 0x8b2   :  { %425 = vrot.lane.b32.xlu1 %v420_v36, %s715_s27 }
 0x920   :  { %v424_v37 = vpop.permute.xlu1 %423 }
 0x921   :  { %v429_v34 = vsel %vm178_vm9, %v424_v37, 0.0 }
 0x922   :  { %430 = vadd.xlane.f32.xlu1 %v429_v34 }
 0x924   :  { %v426_v38 = vpop.permute.xlu1 %425 }
 0x925   :  { %v432_v39 = vsel %vm178_vm9, %v426_v38, 0.0 }
 0x926   :  { %433 = vadd.xlane.f32.xlu0 %v432_v39 }
 0x9af   :  { %v431_v40 = vpop.xlane.xlu1 %430 }
 0x9b0   :  { %v440_v42 = vrot.slane %v431_v40, %v758_v50 }
 0x9b3   :  { %v434_v41 = vpop.xlane.xlu0 %433 }
 0x9b4   :  { %v444_v45 = vrot.slane %v434_v41, %v758_v50 }
 0x9b6   :  { %v445_v46 = vsel %vm195_vm10, %v444_v45, %v440_v42 }
 0x9b7   :  { %v447_v47 = vsel %vm198_vm11, %v445_v46, -inf }
 0x9b8   :  { %448 = vmax.xlane.f32.xlu1 %v447_v47 }
 0xa45   :  { %v449_v48 = vpop.xlane.xlu1 %448 }
 0xa46   :  { %v454_v49 = vrot.slane %v449_v48, %v764_v57  ;;  %v458_v51 = vrot.slane %v449_v48, %v766_v58 }
 0xa48   :  { %v461_v52 = vsub.f32 %v431_v40, %v454_v49  ;;  %v462_v53 = vsub.f32 %v434_v41, %v458_v51 }
 0xa4a   :  { %v463_v54 = vmul.f32 1.442695, %v461_v52  ;;  %v465_v55 = vmul.f32 1.442695, %v462_v53 }
 0xa4c   :  { %651 = vpow2.f32 %v463_v54 }
 0xa4d   :  { %653 = vpow2.f32 %v465_v55 }
 0xa56   :  { %v652_v56 = vpop.eup %651 }
 0xa57   :  { %v654_v59 = vpop.eup %653  ;;  %470 = vperm.xlu1 %638, %v652_v56  }
 0xa58   :  { %473 = vperm.xlu0 %637, %v654_v59  }
 0xad6   :  { %v471_v60 = vpop.permute.xlu1 %470 }
 0xad7   :  { %v474_v61 = vpop.permute.xlu0 %473  ;;  %v478_v62 = vrot.slane %v471_v60, %v758_v50 }
 0xad8   :  { %v482_v63 = vrot.slane %v474_v61, %v758_v50 }
 0xada   :  { %v483_v0 = vsel %vm195_vm10, %v482_v63, %v478_v62 }
 0xadb   :  { %v485_v1 = vsel %vm198_vm11, %v483_v0, 0.0 }
 0xadc   :  { %486 = vadd.xlane.f32.xlu1 %v485_v1 }
 0xb69   :  { %v487_v2 = vpop.xlane.xlu1 %486 }
 0xb6a   :  { %655 = vrcp.f32 %v487_v2 }
 0xb74   :  { %v656_v3 = vpop.eup %655 }
 0xb75   :  { %v497_v4 = vrot.slane %v656_v3, %v766_v58  ;;  %v493_v6 = vrot.slane %v656_v3, %v764_v57 }
 0xb77   :  { %v501_v5 = vmul.f32 %v654_v59, %v497_v4  ;;  %v500_v7 = vmul.f32 %v652_v56, %v493_v6 }
 0xb79   :  { %509 = vperm.xlu0 %637, %v501_v5  }
 0xb7d   :  { %504 = vperm.xlu0 %637, %v500_v7  }
 0xbf8   :  { %v510_v8 = vpop.permute.xlu0 %509 }
 0xbf9   :  { %v513_v50 = vmul.f32 %v750_v43, %v510_v8 }
 0xbfb   :  { %v522_v9 = vsel %vm514_vm14, %v513_v50, 0.0 }
 0xbfc   :  { %v523_v10 = vrot.slane %v522_v9, 4  ;;  %v505_v11 = vpop.permute.xlu0 %504 }
 0xbfd   :  { %v512_v12 = vmul.f32 %v505_v11, %v752_v44 }
 0xbfe   :  { %v524_v13 = vadd.f32 %v523_v10, %v522_v9 }
 0xbff   :  { %v515_v14 = vsel %vm514_vm14, %v512_v12, 0.0 }
 0xc00   :  { %v525_v15 = vrot.slane %v524_v13, 2  ;;  %v516_v16 = vrot.slane %v515_v14, 4 }
 0xc02   :  { %v526_v58 = vadd.f32 %v525_v15, %v524_v13  ;;  %v517_v17 = vadd.f32 %v516_v16, %v515_v14 }
 0xc04   :  { %v518_v18 = vrot.slane %v517_v17, 2  ;;  %v527_v57 = vrot.slane %v526_v58, 1 }
 0xc06   :  { %v519_v19 = vadd.f32 %v518_v18, %v517_v17  ;;  %v528_v20 = vadd.f32 %v527_v57, %v526_v58 }
 0xc08   :  { %533 = vrot.lane.b32.xlu0 %v528_v20, %s715_s27  ;;  %v520_v21 = vrot.slane %v519_v19, 1 }
 0xc0a   :  { %v521_v22 = vadd.f32 %v520_v21, %v519_v19 }
 0xc0c   :  { %531 = vrot.lane.b32.xlu0 %v521_v22, %s715_s27 }
 0xc7a   :  { %v534_v43 = vpop.permute.xlu0 %533 }
 0xc7b   :  { %v538_v23 = vadd.f32 %v534_v43, %v812_v30 }
 0xc7d   :  { %v541_v24 = vrot.slane %v538_v23, 7 }
 0xc7e   :  { %v532_v44 = vpop.permute.xlu0 %531 }
 0xc7f   :  { %v537_v25 = vadd.f32 %v532_v44, %v807_v27 }
 0xc81   :  { %v542_v26 = vsel %vm195_vm10, %v541_v24, %v537_v25 }
 0xc82   :  { %543 = vrot.lane.b32.xlu0 %v542_v26, %s713_s0 }
 0xcf4   :  { %v544_v28 = vpop.permute.xlu0 %543 }
 0xcf5   :  { %547 = vst.msk [vmem:[#allocation5] sm:$0x3] %vm546_vm15, %v544_v28 }
 0xcf6   :  { %690 = shalt.err (!%p687_p12)
}
 0xcf7   :  { %s691_s5 = scalar_lea.hbm %s856_s2, 32 }
 0xcf8   :  { %p692_p13 = scmp.ne.s32.totalorder %s856_s2, %s691_s5  ;;  %p695_p0 = scmp.lt.u32.totalorder %s691_s5, %s856_s2 }
 0xcfa   :  { %p697_p1 = pnand %p695_p0, %p692_p13 }
 0xcfc   :  { %700 = shalt.err (!%p697_p1)
}
 0xcfd   :  { %557 = dma.vmem_to_hbm [thread:$0]  %s555_s29, 32, %s856_s2, [#allocation4]  }
 0xcfe   :  { %703 = dma.done.wait [#allocation4], 32  }
 0xcff   :  { %704 = vsyncadd [#allocation4], 4294967264 }
 0xd00   :  { %561 = vsyncpa [#allocation3], 1 }
 0xd01   :  { %562 = vsyncpa [#allocation4], 1 }

</bundles_post_ra>
